<compile_context>
chip_gen: v7x
topology: tpu7x:2x2x1
jax: 0.10.0
libtpu: 0.0.40
codegen_flags: <defaults>
</compile_context>

<pallas_src>
import functools

import jax
import jax.numpy as jnp
from jax.experimental import pallas as pl
from jax.experimental.pallas import tpu as pltpu

LN_EPS = 1e-5  # torch.nn.LayerNorm default


def _layernorm(h, gamma, beta):
    # f32 math, biased variance, eps inside rsqrt (matches torch defaults).
    h = h.astype(jnp.float32)
    mu = jnp.mean(h, axis=-1, keepdims=True)
    var = jnp.mean((h - mu) ** 2, axis=-1, keepdims=True)
    return (h - mu) * jax.lax.rsqrt(var + LN_EPS) * gamma + beta


def token_embed_kernel(x_ref, w1_ref, b1_ref, g1_ref, be1_ref,
                       w2qt_ref, b2q_ref, mg_ref, mb_ref, mw_ref, o_ref):
    """Fused linear_project + PatchMerge for one batch element.

    x_ref:    (1, T, L+2) bf16, T = N^2 tokens
    w1_ref:   (L+2, hidden) bf16;  b1/g1/be1: (1, hidden) f32
    w2qt_ref: (L, hidden) bf16 — w2 columns permuted into PatchMerge order,
              then transposed;  b2q_ref: (L, 1) f32 (same permutation)
    mg/mb:    (4, 1, T) f32;  mw_ref: (4, T, 2T) bf16
    o_ref:    (1, L//4, 2T) f32
    """
    x = x_ref[0]                                               # (T, L+2) bf16

    # ---- linear_project: Linear(L+2,hidden) -> LayerNorm -> Linear(hidden,L)
    h = jnp.dot(x, w1_ref[...],
                preferred_element_type=jnp.float32) + b1_ref[...]
    h = _layernorm(h, g1_ref[...], be1_ref[...])               # (T, hidden) f32

    # Second Linear computed transposed with pre-permuted output rows:
    #   projq[k*(L/4) + p, c] = linear_project(x)[c, pixel(p, quadrant k)]
    # i.e. the 'b c l -> b l c' transpose AND the 2x2 even/odd gather are
    # already done — purely through the weight permutation in the wrapper.
    projq = jax.lax.dot_general(
        w2qt_ref[...], h.astype(jnp.bfloat16),
        dimension_numbers=(((1,), (1,)), ((), ())),
        preferred_element_type=jnp.float32) + b2q_ref[...]     # (L, T) f32

    # ---- PatchMerge: LayerNorm over the 4*T channels of every 2x2 patch,
    # then Linear(4*T, 2*T, bias=False), decomposed over the 4 quadrants.
    l4 = projq.shape[0] // 4
    t = projq.shape[1]
    quads = [projq[k * l4:(k + 1) * l4, :] for k in range(4)]  # 4 x (L/4, T)

    inv_n = 1.0 / (4 * t)
    mean = (quads[0] + quads[1] + quads[2] + quads[3]
            ).sum(axis=-1, keepdims=True) * inv_n              # (L/4, 1)
    cent = [q - mean for q in quads]
    var = (cent[0] ** 2 + cent[1] ** 2 + cent[2] ** 2 + cent[3] ** 2
           ).sum(axis=-1, keepdims=True) * inv_n
    rstd = jax.lax.rsqrt(var + LN_EPS)

    out = jnp.zeros((l4, mw_ref.shape[2]), jnp.float32)
    for k in range(4):
        ynk = cent[k] * rstd * mg_ref[k] + mb_ref[k]           # (L/4, T) f32
        out = out + jnp.dot(ynk.astype(jnp.bfloat16), mw_ref[k],
                            preferred_element_type=jnp.float32)
    o_ref[0] = out


def init_params(key, patch_size, N, hidden=None):
    L = patch_size ** 2
    hidden = hidden or 2 * L
    dim = N * N
    ks = jax.random.split(key, 9)
    rnd = lambda k, shape, s=0.02: s * jax.random.normal(k, shape, jnp.float32)
    return dict(
        # linear_project
        w1=rnd(ks[0], (L + 2, hidden)),
        b1=rnd(ks[1], (1, hidden)),
        g1=1.0 + rnd(ks[2], (1, hidden)),
        be1=rnd(ks[3], (1, hidden)),
        w2=rnd(ks[4], (hidden, L)),
        b2=rnd(ks[5], (1, L)),
        # PatchMerge
        mg=1.0 + rnd(ks[6], (1, 4 * dim)),
        mb=rnd(ks[7], (1, 4 * dim)),
        mw=rnd(ks[8], (4 * dim, 2 * dim)),
    )


def token_embed_forward(x, params, patch_size):
    B, C, H, W = x.shape
    N = H // patch_size
    L = patch_size * patch_size
    assert C == 1, "flattened patch dim (h*w*c) must equal L = patch_size**2"
    assert H == W == N * patch_size and patch_size % 2 == 0
    dim = N * N
    hidden = params["w1"].shape[1]
    Din = L + 2
    h2 = patch_size // 2
    L4 = L // 4

    # ---- layout plumbing (single XLA copy, already bf16):
    # 'b c (p1 h) (p2 w) -> b (p1 p2) (h w c)' + positional (i, j) features.
    xb = x.astype(jnp.bfloat16)
    xt = xb.reshape(B, C, N, patch_size, N, patch_size)
    xt = xt.transpose(0, 2, 4, 3, 5, 1).reshape(B, dim, L * C)
    ii, jj = jnp.meshgrid(jnp.arange(N), jnp.arange(N), indexing="ij")
    pos = jnp.stack([ii, jj], axis=-1).reshape(1, dim, 2).astype(jnp.bfloat16)
    x3d = jnp.concatenate([xt, jnp.broadcast_to(pos, (B, dim, 2))], axis=-1)

    # ---- fold 'b c l -> b l c' + PatchMerge 2x2 gather into a static
    # permutation of w2's output columns (weight-side only, done once):
    #   perm[k*L4 + hr*h2 + wc] = (2*hr + r_k)*ps + 2*wc + s_k
    # quadrant order k -> (r,s): (0,0),(1,0),(0,1),(1,1)   [torch.cat order]
    ar = jnp.arange(h2)
    rk = jnp.array([0, 1, 0, 1])
    sk = jnp.array([0, 0, 1, 1])
    perm = ((2 * ar[None, :, None] + rk[:, None, None]) * patch_size
            + 2 * ar[None, None, :] + sk[:, None, None]).reshape(-1)   # (L,)
    w2qt = params["w2"].T[perm].astype(jnp.bfloat16)                   # (L, hidden)
    b2q = params["b2"].reshape(-1)[perm].reshape(L, 1)                 # (L, 1)

    # PatchMerge params, split by quadrant so the kernel never lane-slices.
    mg3 = params["mg"].reshape(4, 1, dim)
    mb3 = params["mb"].reshape(4, 1, dim)
    mw3 = params["mw"].reshape(4, dim, 2 * dim).astype(jnp.bfloat16)

    fused = pl.pallas_call(
        token_embed_kernel,
        out_shape=jax.ShapeDtypeStruct((B, L4, 2 * dim), jnp.float32),
        grid=(B,),
        in_specs=[
            pl.BlockSpec((1, dim, Din), lambda b: (b, 0, 0)),   # per-batch tokens
            pl.BlockSpec((Din, hidden), lambda b: (0, 0)),      # weights resident
            pl.BlockSpec((1, hidden), lambda b: (0, 0)),
            pl.BlockSpec((1, hidden), lambda b: (0, 0)),
            pl.BlockSpec((1, hidden), lambda b: (0, 0)),
            pl.BlockSpec((L, hidden), lambda b: (0, 0)),
            pl.BlockSpec((L, 1), lambda b: (0, 0)),
            pl.BlockSpec((4, 1, dim), lambda b: (0, 0, 0)),
            pl.BlockSpec((4, 1, dim), lambda b: (0, 0, 0)),
            pl.BlockSpec((4, dim, 2 * dim), lambda b: (0, 0, 0)),
        ],
        out_specs=pl.BlockSpec((1, L4, 2 * dim), lambda b: (b, 0, 0)),
        compiler_params=pltpu.CompilerParams(
            dimension_semantics=("parallel",),
            vmem_limit_bytes=32 * 1024 * 1024,
        ),
    )
    return fused(x3d, params["w1"].astype(jnp.bfloat16), params["b1"],
                 params["g1"], params["be1"], w2qt, b2q, mg3, mb3, mw3)


def token_embed_reference(x, params, patch_size):
    """Pure-JAX f32 mirror of the PyTorch module (for a tolerance check)."""
    B, C, H, W = x.shape
    N = H // patch_size
    L = patch_size * patch_size
    dim = N * N
    xt = x.reshape(B, C, N, patch_size, N, patch_size)
    xt = xt.transpose(0, 2, 4, 3, 5, 1).reshape(B, dim, L * C)
    ii, jj = jnp.meshgrid(jnp.arange(N), jnp.arange(N), indexing="ij")
    pos = jnp.stack([ii, jj], -1).reshape(1, dim, 2).astype(xt.dtype)
    xt = jnp.concatenate([xt, jnp.broadcast_to(pos, (B, dim, 2))], axis=-1)
    h = xt @ params["w1"] + params["b1"]
    h = _layernorm(h, params["g1"], params["be1"])
    proj = h @ params["w2"] + params["b2"]                     # (B, dim, L)
    xm = jnp.transpose(proj, (0, 2, 1)).reshape(B, patch_size, patch_size, dim)
    x0 = xm[:, 0::2, 0::2, :]
    x1 = xm[:, 1::2, 0::2, :]
    x2 = xm[:, 0::2, 1::2, :]
    x3 = xm[:, 1::2, 1::2, :]
    ym = jnp.concatenate([x0, x1, x2, x3], -1).reshape(B, L // 4, 4 * dim)
    yn = _layernorm(ym, params["mg"], params["mb"])
    return yn @ params["mw"]


if __name__ == "__main__":
    # small-but-consistent shapes: img_size = N * patch_size, C must be 1
    patch_size = 8
    N = 2
    img_size = patch_size * N        # 16
    B = 2

    key = jax.random.PRNGKey(0)
    kx, kp = jax.random.split(key)
    x = jax.random.normal(kx, (B, 1, img_size, img_size), jnp.float32)
    params = init_params(kp, patch_size, N)   # hidden defaults to 2*L = 128

    fwd = jax.jit(functools.partial(token_embed_forward, patch_size=patch_size))
    out = jax.block_until_ready(fwd(x, params))
    assert out.shape == (B, (patch_size ** 2) // 4, 2 * N * N), out.shape
    assert bool(jnp.all(jnp.isfinite(out)))

    ref = token_embed_reference(x, params, patch_size)
    max_err = float(jnp.max(jnp.abs(out - ref)))
    assert jnp.allclose(out, ref, atol=2e-2, rtol=2e-2), max_err
    print("KERNEL_OK")
</pallas_src>

<mosaic_0001>
module attributes {stable_mosaic.version = 11 : i64} {
  func.func @token_embed_kernel(%arg0: i32, %arg1: memref<1x4x66xbf16, #tpu.memory_space<vmem>>, %arg2: memref<66x128xbf16, #tpu.memory_space<vmem>>, %arg3: memref<1x128xf32, #tpu.memory_space<vmem>>, %arg4: memref<1x128xf32, #tpu.memory_space<vmem>>, %arg5: memref<1x128xf32, #tpu.memory_space<vmem>>, %arg6: memref<64x128xbf16, #tpu.memory_space<vmem>>, %arg7: memref<64x1xf32, #tpu.memory_space<vmem>>, %arg8: memref<4x1x4xf32, #tpu.memory_space<vmem>>, %arg9: memref<4x1x4xf32, #tpu.memory_space<vmem>>, %arg10: memref<4x4x8xbf16, #tpu.memory_space<vmem>>, %arg11: memref<1x16x8xf32, #tpu.memory_space<vmem>>) attributes {dimension_semantics = [#tpu.dimension_semantics<parallel>], iteration_bounds = array<i64: 2>, scalar_prefetch = 0 : i64, scratch_operands = 0 : i64, tpu.core_type = #tpu.core_type<tc>, window_params = [{transform_indices = @transform_0, window_bounds = array<i64: 1, 4, 66>}, {pipeline_mode = #tpu.pipeline_mode<synchronous>, transform_indices = @transform_1, window_bounds = array<i64: 66, 128>}, {pipeline_mode = #tpu.pipeline_mode<synchronous>, transform_indices = @transform_2, window_bounds = array<i64: 1, 128>}, {pipeline_mode = #tpu.pipeline_mode<synchronous>, transform_indices = @transform_3, window_bounds = array<i64: 1, 128>}, {pipeline_mode = #tpu.pipeline_mode<synchronous>, transform_indices = @transform_4, window_bounds = array<i64: 1, 128>}, {pipeline_mode = #tpu.pipeline_mode<synchronous>, transform_indices = @transform_5, window_bounds = array<i64: 64, 128>}, {pipeline_mode = #tpu.pipeline_mode<synchronous>, transform_indices = @transform_6, window_bounds = array<i64: 64, 1>}, {pipeline_mode = #tpu.pipeline_mode<synchronous>, transform_indices = @transform_7, window_bounds = array<i64: 4, 1, 4>}, {pipeline_mode = #tpu.pipeline_mode<synchronous>, transform_indices = @transform_8, window_bounds = array<i64: 4, 1, 4>}, {pipeline_mode = #tpu.pipeline_mode<synchronous>, transform_indices = @transform_9, window_bounds = array<i64: 4, 4, 8>}, {transform_indices = @transform_10, window_bounds = array<i64: 1, 16, 8>}]} {
    %c0 = arith.constant 0 : index
    %c0_0 = arith.constant 0 : index
    %c0_1 = arith.constant 0 : index
    %0 = vector.load %arg1[%c0, %c0_0, %c0_1] : memref<1x4x66xbf16, #tpu.memory_space<vmem>>, vector<1x4x66xbf16>
    %1 = vector.shape_cast %0 : vector<1x4x66xbf16> to vector<4x66xbf16>
    %c0_2 = arith.constant 0 : index
    %c0_3 = arith.constant 0 : index
    %2 = vector.load %arg2[%c0_2, %c0_3] : memref<66x128xbf16, #tpu.memory_space<vmem>>, vector<66x128xbf16>
    %cst = arith.constant dense<0.000000e+00> : vector<4x128xf32>
    %3 = tpu.matmul %1, %2, %cst {dimension_numbers = #tpu.dot_dimension_numbers<[1], [0], [0], [1], [0, 0, 1, 1], [], []>} : vector<4x66xbf16>, vector<66x128xbf16>, vector<4x128xf32> -> vector<4x128xf32>
    %c0_4 = arith.constant 0 : index
    %c0_5 = arith.constant 0 : index
    %4 = vector.load %arg3[%c0_4, %c0_5] : memref<1x128xf32, #tpu.memory_space<vmem>>, vector<1x128xf32>
    %5 = vector.broadcast %4 : vector<1x128xf32> to vector<4x128xf32>
    %6 = arith.addf %3, %5 : vector<4x128xf32>
    %c0_6 = arith.constant 0 : index
    %c0_7 = arith.constant 0 : index
    %7 = vector.load %arg4[%c0_6, %c0_7] : memref<1x128xf32, #tpu.memory_space<vmem>>, vector<1x128xf32>
    %c0_8 = arith.constant 0 : index
    %c0_9 = arith.constant 0 : index
    %8 = vector.load %arg5[%c0_8, %c0_9] : memref<1x128xf32, #tpu.memory_space<vmem>>, vector<1x128xf32>
    %cst_10 = arith.constant dense<0.000000e+00> : vector<4xf32>
    %9 = vector.multi_reduction <add>, %6, %cst_10 [1] : vector<4x128xf32> to vector<4xf32>
    %10 = vector.shape_cast %9 : vector<4xf32> to vector<4x1xf32>
    %cst_11 = arith.constant 1.280000e+02 : f32
    %11 = vector.broadcast %cst_11 : f32 to vector<4x1xf32>
    %12 = arith.divf %10, %11 : vector<4x1xf32>
    %13 = vector.broadcast %12 : vector<4x1xf32> to vector<4x128xf32>
    %14 = arith.subf %6, %13 : vector<4x128xf32>
    %15 = arith.mulf %14, %14 : vector<4x128xf32>
    %cst_12 = arith.constant dense<0.000000e+00> : vector<4xf32>
    %16 = vector.multi_reduction <add>, %15, %cst_12 [1] : vector<4x128xf32> to vector<4xf32>
    %17 = vector.shape_cast %16 : vector<4xf32> to vector<4x1xf32>
    %cst_13 = arith.constant 1.280000e+02 : f32
    %18 = vector.broadcast %cst_13 : f32 to vector<4x1xf32>
    %19 = arith.divf %17, %18 : vector<4x1xf32>
    %20 = vector.broadcast %12 : vector<4x1xf32> to vector<4x128xf32>
    %21 = arith.subf %6, %20 : vector<4x128xf32>
    %cst_14 = arith.constant 9.99999974E-6 : f32
    %22 = vector.broadcast %cst_14 : f32 to vector<4x1xf32>
    %23 = arith.addf %19, %22 : vector<4x1xf32>
    %24 = math.rsqrt %23 : vector<4x1xf32>
    %25 = vector.broadcast %24 : vector<4x1xf32> to vector<4x128xf32>
    %26 = arith.mulf %21, %25 : vector<4x128xf32>
    %27 = vector.broadcast %7 : vector<1x128xf32> to vector<4x128xf32>
    %28 = arith.mulf %26, %27 : vector<4x128xf32>
    %29 = vector.broadcast %8 : vector<1x128xf32> to vector<4x128xf32>
    %30 = arith.addf %28, %29 : vector<4x128xf32>
    %c0_15 = arith.constant 0 : index
    %c0_16 = arith.constant 0 : index
    %31 = vector.load %arg6[%c0_15, %c0_16] : memref<64x128xbf16, #tpu.memory_space<vmem>>, vector<64x128xbf16>
    %32 = arith.truncf %30 : vector<4x128xf32> to vector<4x128xbf16>
    %cst_17 = arith.constant dense<0.000000e+00> : vector<64x4xf32>
    %33 = tpu.matmul %31, %32, %cst_17 {dimension_numbers = #tpu.dot_dimension_numbers<[1], [1], [0], [0], [0, 0, 1, 0], [], []>} : vector<64x128xbf16>, vector<4x128xbf16>, vector<64x4xf32> -> vector<64x4xf32>
    %c0_18 = arith.constant 0 : index
    %c0_19 = arith.constant 0 : index
    %34 = vector.load %arg7[%c0_18, %c0_19] : memref<64x1xf32, #tpu.memory_space<vmem>>, vector<64x1xf32>
    %35 = vector.broadcast %34 : vector<64x1xf32> to vector<64x4xf32>
    %36 = arith.addf %33, %35 : vector<64x4xf32>
    %37 = vector.extract_strided_slice %36 {offsets = [0, 0], sizes = [16, 4], strides = [1, 1]} : vector<64x4xf32> to vector<16x4xf32>
    %38 = vector.extract_strided_slice %36 {offsets = [16, 0], sizes = [16, 4], strides = [1, 1]} : vector<64x4xf32> to vector<16x4xf32>
    %39 = vector.extract_strided_slice %36 {offsets = [32, 0], sizes = [16, 4], strides = [1, 1]} : vector<64x4xf32> to vector<16x4xf32>
    %40 = vector.extract_strided_slice %36 {offsets = [48, 0], sizes = [16, 4], strides = [1, 1]} : vector<64x4xf32> to vector<16x4xf32>
    %41 = arith.addf %37, %38 : vector<16x4xf32>
    %42 = arith.addf %41, %39 : vector<16x4xf32>
    %43 = arith.addf %42, %40 : vector<16x4xf32>
    %cst_20 = arith.constant dense<0.000000e+00> : vector<16xf32>
    %44 = vector.multi_reduction <add>, %43, %cst_20 [1] : vector<16x4xf32> to vector<16xf32>
    %45 = vector.shape_cast %44 : vector<16xf32> to vector<16x1xf32>
    %cst_21 = arith.constant 6.250000e-02 : f32
    %46 = vector.broadcast %cst_21 : f32 to vector<16x1xf32>
    %47 = arith.mulf %45, %46 : vector<16x1xf32>
    %48 = vector.broadcast %47 : vector<16x1xf32> to vector<16x4xf32>
    %49 = arith.subf %37, %48 : vector<16x4xf32>
    %50 = vector.broadcast %47 : vector<16x1xf32> to vector<16x4xf32>
    %51 = arith.subf %38, %50 : vector<16x4xf32>
    %52 = vector.broadcast %47 : vector<16x1xf32> to vector<16x4xf32>
    %53 = arith.subf %39, %52 : vector<16x4xf32>
    %54 = vector.broadcast %47 : vector<16x1xf32> to vector<16x4xf32>
    %55 = arith.subf %40, %54 : vector<16x4xf32>
    %56 = arith.mulf %49, %49 : vector<16x4xf32>
    %57 = arith.mulf %51, %51 : vector<16x4xf32>
    %58 = arith.addf %56, %57 : vector<16x4xf32>
    %59 = arith.mulf %53, %53 : vector<16x4xf32>
    %60 = arith.addf %58, %59 : vector<16x4xf32>
    %61 = arith.mulf %55, %55 : vector<16x4xf32>
    %62 = arith.addf %60, %61 : vector<16x4xf32>
    %cst_22 = arith.constant dense<0.000000e+00> : vector<16xf32>
    %63 = vector.multi_reduction <add>, %62, %cst_22 [1] : vector<16x4xf32> to vector<16xf32>
    %64 = vector.shape_cast %63 : vector<16xf32> to vector<16x1xf32>
    %cst_23 = arith.constant 6.250000e-02 : f32
    %65 = vector.broadcast %cst_23 : f32 to vector<16x1xf32>
    %66 = arith.mulf %64, %65 : vector<16x1xf32>
    %cst_24 = arith.constant 9.99999974E-6 : f32
    %67 = vector.broadcast %cst_24 : f32 to vector<16x1xf32>
    %68 = arith.addf %66, %67 : vector<16x1xf32>
    %69 = math.rsqrt %68 : vector<16x1xf32>
    %cst_25 = arith.constant 0.000000e+00 : f32
    %70 = vector.broadcast %cst_25 : f32 to vector<16x8xf32>
    %71 = vector.broadcast %69 : vector<16x1xf32> to vector<16x4xf32>
    %72 = arith.mulf %49, %71 : vector<16x4xf32>
    %c0_26 = arith.constant 0 : index
    %c0_27 = arith.constant 0 : index
    %c0_28 = arith.constant 0 : index
    %73 = vector.load %arg8[%c0_26, %c0_27, %c0_28] : memref<4x1x4xf32, #tpu.memory_space<vmem>>, vector<1x1x4xf32>
    %74 = vector.shape_cast %73 : vector<1x1x4xf32> to vector<1x4xf32>
    %75 = vector.broadcast %74 : vector<1x4xf32> to vector<16x4xf32>
    %76 = arith.mulf %72, %75 : vector<16x4xf32>
    %c0_29 = arith.constant 0 : index
    %c0_30 = arith.constant 0 : index
    %c0_31 = arith.constant 0 : index
    %77 = vector.load %arg9[%c0_29, %c0_30, %c0_31] : memref<4x1x4xf32, #tpu.memory_space<vmem>>, vector<1x1x4xf32>
    %78 = vector.shape_cast %77 : vector<1x1x4xf32> to vector<1x4xf32>
    %79 = vector.broadcast %78 : vector<1x4xf32> to vector<16x4xf32>
    %80 = arith.addf %76, %79 : vector<16x4xf32>
    %81 = arith.truncf %80 : vector<16x4xf32> to vector<16x4xbf16>
    %c0_32 = arith.constant 0 : index
    %c0_33 = arith.constant 0 : index
    %c0_34 = arith.constant 0 : index
    %82 = vector.load %arg10[%c0_32, %c0_33, %c0_34] : memref<4x4x8xbf16, #tpu.memory_space<vmem>>, vector<1x4x8xbf16>
    %83 = vector.shape_cast %82 : vector<1x4x8xbf16> to vector<4x8xbf16>
    %cst_35 = arith.constant dense<0.000000e+00> : vector<16x8xf32>
    %84 = tpu.matmul %81, %83, %cst_35 {dimension_numbers = #tpu.dot_dimension_numbers<[1], [0], [0], [1], [0, 0, 1, 1], [], []>} : vector<16x4xbf16>, vector<4x8xbf16>, vector<16x8xf32> -> vector<16x8xf32>
    %85 = arith.addf %70, %84 : vector<16x8xf32>
    %86 = vector.broadcast %69 : vector<16x1xf32> to vector<16x4xf32>
    %87 = arith.mulf %51, %86 : vector<16x4xf32>
    %c1 = arith.constant 1 : index
    %c0_36 = arith.constant 0 : index
    %c0_37 = arith.constant 0 : index
    %88 = vector.load %arg8[%c1, %c0_36, %c0_37] : memref<4x1x4xf32, #tpu.memory_space<vmem>>, vector<1x1x4xf32>
    %89 = vector.shape_cast %88 : vector<1x1x4xf32> to vector<1x4xf32>
    %90 = vector.broadcast %89 : vector<1x4xf32> to vector<16x4xf32>
    %91 = arith.mulf %87, %90 : vector<16x4xf32>
    %c1_38 = arith.constant 1 : index
    %c0_39 = arith.constant 0 : index
    %c0_40 = arith.constant 0 : index
    %92 = vector.load %arg9[%c1_38, %c0_39, %c0_40] : memref<4x1x4xf32, #tpu.memory_space<vmem>>, vector<1x1x4xf32>
    %93 = vector.shape_cast %92 : vector<1x1x4xf32> to vector<1x4xf32>
    %94 = vector.broadcast %93 : vector<1x4xf32> to vector<16x4xf32>
    %95 = arith.addf %91, %94 : vector<16x4xf32>
    %96 = arith.truncf %95 : vector<16x4xf32> to vector<16x4xbf16>
    %c1_41 = arith.constant 1 : index
    %c0_42 = arith.constant 0 : index
    %c0_43 = arith.constant 0 : index
    %97 = vector.load %arg10[%c1_41, %c0_42, %c0_43] : memref<4x4x8xbf16, #tpu.memory_space<vmem>>, vector<1x4x8xbf16>
    %98 = vector.shape_cast %97 : vector<1x4x8xbf16> to vector<4x8xbf16>
    %cst_44 = arith.constant dense<0.000000e+00> : vector<16x8xf32>
    %99 = tpu.matmul %96, %98, %cst_44 {dimension_numbers = #tpu.dot_dimension_numbers<[1], [0], [0], [1], [0, 0, 1, 1], [], []>} : vector<16x4xbf16>, vector<4x8xbf16>, vector<16x8xf32> -> vector<16x8xf32>
    %100 = arith.addf %85, %99 : vector<16x8xf32>
    %101 = vector.broadcast %69 : vector<16x1xf32> to vector<16x4xf32>
    %102 = arith.mulf %53, %101 : vector<16x4xf32>
    %c2 = arith.constant 2 : index
    %c0_45 = arith.constant 0 : index
    %c0_46 = arith.constant 0 : index
    %103 = vector.load %arg8[%c2, %c0_45, %c0_46] : memref<4x1x4xf32, #tpu.memory_space<vmem>>, vector<1x1x4xf32>
    %104 = vector.shape_cast %103 : vector<1x1x4xf32> to vector<1x4xf32>
    %105 = vector.broadcast %104 : vector<1x4xf32> to vector<16x4xf32>
    %106 = arith.mulf %102, %105 : vector<16x4xf32>
    %c2_47 = arith.constant 2 : index
    %c0_48 = arith.constant 0 : index
    %c0_49 = arith.constant 0 : index
    %107 = vector.load %arg9[%c2_47, %c0_48, %c0_49] : memref<4x1x4xf32, #tpu.memory_space<vmem>>, vector<1x1x4xf32>
    %108 = vector.shape_cast %107 : vector<1x1x4xf32> to vector<1x4xf32>
    %109 = vector.broadcast %108 : vector<1x4xf32> to vector<16x4xf32>
    %110 = arith.addf %106, %109 : vector<16x4xf32>
    %111 = arith.truncf %110 : vector<16x4xf32> to vector<16x4xbf16>
    %c2_50 = arith.constant 2 : index
    %c0_51 = arith.constant 0 : index
    %c0_52 = arith.constant 0 : index
    %112 = vector.load %arg10[%c2_50, %c0_51, %c0_52] : memref<4x4x8xbf16, #tpu.memory_space<vmem>>, vector<1x4x8xbf16>
    %113 = vector.shape_cast %112 : vector<1x4x8xbf16> to vector<4x8xbf16>
    %cst_53 = arith.constant dense<0.000000e+00> : vector<16x8xf32>
    %114 = tpu.matmul %111, %113, %cst_53 {dimension_numbers = #tpu.dot_dimension_numbers<[1], [0], [0], [1], [0, 0, 1, 1], [], []>} : vector<16x4xbf16>, vector<4x8xbf16>, vector<16x8xf32> -> vector<16x8xf32>
    %115 = arith.addf %100, %114 : vector<16x8xf32>
    %116 = vector.broadcast %69 : vector<16x1xf32> to vector<16x4xf32>
    %117 = arith.mulf %55, %116 : vector<16x4xf32>
    %c3 = arith.constant 3 : index
    %c0_54 = arith.constant 0 : index
    %c0_55 = arith.constant 0 : index
    %118 = vector.load %arg8[%c3, %c0_54, %c0_55] : memref<4x1x4xf32, #tpu.memory_space<vmem>>, vector<1x1x4xf32>
    %119 = vector.shape_cast %118 : vector<1x1x4xf32> to vector<1x4xf32>
    %120 = vector.broadcast %119 : vector<1x4xf32> to vector<16x4xf32>
    %121 = arith.mulf %117, %120 : vector<16x4xf32>
    %c3_56 = arith.constant 3 : index
    %c0_57 = arith.constant 0 : index
    %c0_58 = arith.constant 0 : index
    %122 = vector.load %arg9[%c3_56, %c0_57, %c0_58] : memref<4x1x4xf32, #tpu.memory_space<vmem>>, vector<1x1x4xf32>
    %123 = vector.shape_cast %122 : vector<1x1x4xf32> to vector<1x4xf32>
    %124 = vector.broadcast %123 : vector<1x4xf32> to vector<16x4xf32>
    %125 = arith.addf %121, %124 : vector<16x4xf32>
    %126 = arith.truncf %125 : vector<16x4xf32> to vector<16x4xbf16>
    %c3_59 = arith.constant 3 : index
    %c0_60 = arith.constant 0 : index
    %c0_61 = arith.constant 0 : index
    %127 = vector.load %arg10[%c3_59, %c0_60, %c0_61] : memref<4x4x8xbf16, #tpu.memory_space<vmem>>, vector<1x4x8xbf16>
    %128 = vector.shape_cast %127 : vector<1x4x8xbf16> to vector<4x8xbf16>
    %cst_62 = arith.constant dense<0.000000e+00> : vector<16x8xf32>
    %129 = tpu.matmul %126, %128, %cst_62 {dimension_numbers = #tpu.dot_dimension_numbers<[1], [0], [0], [1], [0, 0, 1, 1], [], []>} : vector<16x4xbf16>, vector<4x8xbf16>, vector<16x8xf32> -> vector<16x8xf32>
    %130 = arith.addf %115, %129 : vector<16x8xf32>
    %c0_63 = arith.constant 0 : index
    %c0_64 = arith.constant 0 : index
    %c0_65 = arith.constant 0 : index
    %131 = vector.load %arg11[%c0_63, %c0_64, %c0_65] : memref<1x16x8xf32, #tpu.memory_space<vmem>>, vector<1x16x8xf32>
    %132 = vector.shape_cast %131 : vector<1x16x8xf32> to vector<16x8xf32>
    %133 = vector.shape_cast %130 : vector<16x8xf32> to vector<1x16x8xf32>
    tpu.vector_store %arg11[%c0_63, %c0_64, %c0_65], %133 {strides = array<i32>} : memref<1x16x8xf32, #tpu.memory_space<vmem>>, vector<1x16x8xf32>,
    return
  }
  func.func @transform_0(%arg0: i32) -> (i32, i32, i32) {
    %c0_i32 = arith.constant 0 : i32
    %c0_i32_0 = arith.constant 0 : i32
    %c0_i32_1 = arith.constant 0 : i32
    return %arg0, %c0_i32, %c0_i32_0 : i32, i32, i32
  }
  func.func @transform_1(%arg0: i32) -> (i32, i32) {
    %c0_i32 = arith.constant 0 : i32
    %c0_i32_0 = arith.constant 0 : i32
    %c0_i32_1 = arith.constant 0 : i32
    return %c0_i32, %c0_i32_0 : i32, i32
  }
  func.func @transform_2(%arg0: i32) -> (i32, i32) {
    %c0_i32 = arith.constant 0 : i32
    %c0_i32_0 = arith.constant 0 : i32
    %c0_i32_1 = arith.constant 0 : i32
    return %c0_i32, %c0_i32_0 : i32, i32
  }
  func.func @transform_3(%arg0: i32) -> (i32, i32) {
    %c0_i32 = arith.constant 0 : i32
    %c0_i32_0 = arith.constant 0 : i32
    %c0_i32_1 = arith.constant 0 : i32
    return %c0_i32, %c0_i32_0 : i32, i32
  }
  func.func @transform_4(%arg0: i32) -> (i32, i32) {
    %c0_i32 = arith.constant 0 : i32
    %c0_i32_0 = arith.constant 0 : i32
    %c0_i32_1 = arith.constant 0 : i32
    return %c0_i32, %c0_i32_0 : i32, i32
  }
  func.func @transform_5(%arg0: i32) -> (i32, i32) {
    %c0_i32 = arith.constant 0 : i32
    %c0_i32_0 = arith.constant 0 : i32
    %c0_i32_1 = arith.constant 0 : i32
    return %c0_i32, %c0_i32_0 : i32, i32
  }
  func.func @transform_6(%arg0: i32) -> (i32, i32) {
    %c0_i32 = arith.constant 0 : i32
    %c0_i32_0 = arith.constant 0 : i32
    %c0_i32_1 = arith.constant 0 : i32
    return %c0_i32, %c0_i32_0 : i32, i32
  }
  func.func @transform_7(%arg0: i32) -> (i32, i32, i32) {
    %c0_i32 = arith.constant 0 : i32
    %c0_i32_0 = arith.constant 0 : i32
    %c0_i32_1 = arith.constant 0 : i32
    %c0_i32_2 = arith.constant 0 : i32
    return %c0_i32, %c0_i32_0, %c0_i32_1 : i32, i32, i32
  }
  func.func @transform_8(%arg0: i32) -> (i32, i32, i32) {
    %c0_i32 = arith.constant 0 : i32
    %c0_i32_0 = arith.constant 0 : i32
    %c0_i32_1 = arith.constant 0 : i32
    %c0_i32_2 = arith.constant 0 : i32
    return %c0_i32, %c0_i32_0, %c0_i32_1 : i32, i32, i32
  }
  func.func @transform_9(%arg0: i32) -> (i32, i32, i32) {
    %c0_i32 = arith.constant 0 : i32
    %c0_i32_0 = arith.constant 0 : i32
    %c0_i32_1 = arith.constant 0 : i32
    %c0_i32_2 = arith.constant 0 : i32
    return %c0_i32, %c0_i32_0, %c0_i32_1 : i32, i32, i32
  }
  func.func @transform_10(%arg0: i32) -> (i32, i32, i32) {
    %c0_i32 = arith.constant 0 : i32
    %c0_i32_0 = arith.constant 0 : i32
    %c0_i32_1 = arith.constant 0 : i32
    return %arg0, %c0_i32, %c0_i32_0 : i32, i32, i32
  }
}

</mosaic_0001>

<bundles_post_ra>
// kernel: token_embed_forward.1
= control target key start
LH: loop header
LB: loop body
LE: loop exit
PB: predicated region body
PF: predicated region fallthrough
CT: control target
= control target key end

     0   :  { %s1242_s13 = smov 0   ;;  %s1405_s0 = inlined_call_operand.vmem [shape: bf16[2,4,66], index: 0, kind: input, shape index: {}]   ;;  %s1406_s1 = inlined_call_operand.vmem [shape: bf16[66,128], index: 1, kind: input, shape index: {}]   ;;  %s1407_s2 = inlined_call_operand.vmem [shape: f32[1,128], index: 2, kind: input, shape index: {}]   ;;  %s1408_s3 = inlined_call_operand.vmem [shape: f32[1,128], index: 3, kind: input, shape index: {}]   ;;  %s1409_s4 = inlined_call_operand.vmem [shape: f32[1,128], index: 4, kind: input, shape index: {}]   ;;  %s1410_s5 = inlined_call_operand.vmem [shape: bf16[64,128], index: 5, kind: input, shape index: {}]   ;;  %s1411_s6 = inlined_call_operand.vmem [shape: f32[64,1], index: 6, kind: input, shape index: {}]   ;;  %s1412_s7 = inlined_call_operand.vmem [shape: f32[4,1,4], index: 7, kind: input, shape index: {}]   ;;  %s1413_s8 = inlined_call_operand.vmem [shape: f32[4,1,4], index: 8, kind: input, shape index: {}]   ;;  %s1414_s9 = inlined_call_operand.vmem [shape: bf16[4,4,8], index: 9, kind: input, shape index: {}]   ;;  %s1415_s10 = inlined_call_operand.vmem [shape: f32[2,16,8], index: 10, kind: output, shape index: {}]  }
   0x1 LB: > { %s1024_s14 = sadd.s32 4294967295, %s1182_s13   ;;  %p1028_p0 = scmp.ge.s32.totalorder %s1182_s13, 1  ;;  %s1182_s13 = sphi %s1242_s13, %s20_s13  }
   0x2   : > { %p311_p1 = scmp.lt.s32.totalorder %s1182_s13, 3 }
   0x4   : > { %p312_p2 = pnand %p1028_p0, %p311_p1 }
   0x5   : > { %v1161_v0 = vld [vmem:[%s1406_s1] sm:$0xff] (!%p312_p2)   ;;  %v1184_v1 = vmov (!%p312_p2), 0.0   ;;  %v1162_v2 = vld [vmem:[%s1406_s1 + $0x8] sm:$0xff] (!%p312_p2)   ;;  %vm1185_vm0 = vmmov (!%p312_p2), 0   ;;  %p348_p3 = scmp.lt.s32.totalorder (!%p312_p2), %s1024_s14, 1  ;;  %v1163_v3 = vld [vmem:[%s1406_s1 + $0x10] sm:$0xff] (!%p312_p2)  }
   0x6   : > { %315 = sbr.rel (%p312_p2) target bundleno = 1367 (0x557), region = 60  ;;  %1088 = vmatprep.subr.bf16.mxu0 (!%p312_p2), %v1184_v1  ;;  %1112 = vmatprep.subr.bf16.mxu1 (!%p312_p2), %v1184_v1  ;;  %v1164_v4 = vld [vmem:[%s1406_s1 + $0x18] sm:$0xff] (!%p312_p2)   ;;  %v1165_v5 = vld [vmem:[%s1406_s1 + $0x20] ss:$0 sps:$4 sm:$0x11] (!%p312_p2)   ;;  %vm406_vm1 = vcmask (!%p312_p2), 1040384  }
   0x7   : > { %1089 = vmatpush3.bf16.msra.mxu0 (!%p312_p2), %v1161_v0  ;;  %1098 = vmatprep.mubr.msk.bf16.mxu0 (!%p312_p2), %vm1185_vm0, %v1184_v1  ;;  %v408_v6 = vsel (!%p312_p2), %vm406_vm1, %v1165_v5, 0  ;;  %vm402_vm2 = vcmask (!%p312_p2), 539648   ;;  %v1032_v8 = vld [vmem:[%s1407_s2] ss:$0 sm:$0xff] (!%p312_p2)  ;;  %vm452_vm3 = vcmask (!%p312_p2), 1043456   ;;  %v1186_v22 = vmov (!%p312_p2), 0  }
   0x8   : > { %1090 = vmatprep.subr.bf16.mxu0 (!%p312_p2), %v1184_v1  ;;  %1114 = vmatprep.mubr.msk.bf16.mxu1 (!%p312_p2), %vm1185_vm0, %v1184_v1  ;;  %v1166_v20 = vld [vmem:[%s1410_s5] sm:$0xff] (!%p312_p2)   ;;  %v492_v23 = vld [vmem:[%s1411_s6 + $0x10] sm:$0xff] (!%p312_p2)  ;;  %v491_v24 = vld [vmem:[%s1411_s6 + $0x8] sm:$0xff] (!%p312_p2)  ;;  %vm633_vm4 = vcmask (!%p312_p2), 31744   ;;  %vm726_vm5 = vcmask (!%p312_p2), 1041408   ;;  %vm966_vm6 = vcmask (!%p312_p2), 64512  }
   0x9   : > { %v490_v21 = vld [vmem:[%s1411_s6] sm:$0xff] (!%p312_p2)  ;;  %1159 = vset.pattern.permute.xlu1 (!%p312_p2), %v1186_v22  ;;  %1160 = vset.pattern.permute.xlu0 (!%p312_p2), %v1186_v22  ;;  %v493_v25 = vld [vmem:[%s1411_s6 + $0x18] sm:$0xff] (!%p312_p2)  ;;  %v495_v27 = vld [vmem:[%s1411_s6 + $0x28] sm:$0xff] (!%p312_p2) }
   0xa   : > { %500 = vperm.xlu1 (!%p312_p2), %1159, %v490_v21   ;;  %v494_v26 = vld [vmem:[%s1411_s6 + $0x20] sm:$0xff] (!%p312_p2)  ;;  %v496_v28 = vld [vmem:[%s1411_s6 + $0x30] sm:$0xff] (!%p312_p2)  ;;  %v497_v29 = vld [vmem:[%s1411_s6 + $0x38] sm:$0xff] (!%p312_p2) }
   0xb   : > { %1091 = vmatpush3.bf16.msra.mxu0 (!%p312_p2), %v1162_v2  ;;  %v1039_v34 = vld [vmem:[%s1408_s3] ss:$0 sm:$0xff] (!%p312_p2)  ;;  %v1167_v40 = vld [vmem:[%s1410_s5 + $0x8] sm:$0xff] (!%p312_p2)   ;;  %v1168_v41 = vld [vmem:[%s1410_s5 + $0x10] sm:$0xff] (!%p312_p2)  }
   0xc   : > { %1092 = vmatprep.subr.bf16.mxu0 (!%p312_p2), %v1184_v1  ;;  %v1040_v36 = vld [vmem:[%s1409_s4] ss:$0 sm:$0xff] (!%p312_p2)  ;;  %v1169_v42 = vld [vmem:[%s1410_s5 + $0x18] sm:$0xff] (!%p312_p2)  }
   0xd   : > { %s1417_s14 = smov (!%p348_p3, %s1024_s14), 1 }
   0xe   : > { %s1029_s25 = sshll.u32 %s1417_s14, 1  ;;  %505 = vperm.xlu1 %1159, %v491_v24   ;;  %s1068_s29 = sshll.u32 %s1417_s14, 4 }
   0xf   : > { %1093 = vmatpush3.bf16.msra.mxu0 %v1163_v3  ;;  %s351_s28 = scalar_lea.vmem %s1405_s0, %s1029_s25  ;;  %s356_s12 = scalar_lea.vmem %s1415_s10, %s1068_s29 }
  0x10   : > { %1094 = vmatprep.subr.bf16.mxu0 %v1184_v1  ;;  %v358_v7 = vld [vmem:[%s351_s28] sm:$0x3] }
  0x12   : > { %515 = vperm.xlu1 %1159, %v493_v25  }
  0x13   : > { %1095 = vmatpush3.bf16.msra.mxu0 %v1164_v4 }
  0x14   : > { %1096 = vmatprep.subr.bf16.mxu0 %v1184_v1 }
  0x16   : > { %520 = vperm.xlu1 %1159, %v494_v26  }
  0x17   : > { %1097 = vmatpush3.bf16.msra.mxu0 %v408_v6 }
  0x1a   : > { %1099 = vmatmul.mubr.msk.bf16.vlgmr.msra.gmra.mrb[0].mxu0 %vm402_vm2, %v358_v7  ;;  %525 = vperm.xlu1 %1159, %v495_v27  }
  0x1b   : > { %1104 = vmatprep.mubr.bf16.mxu0 %v1166_v20 }
  0x1e   : > { %530 = vperm.xlu1 %1159, %v496_v28  }
  0x22   : > { %535 = vperm.xlu1 %1159, %v497_v29  }
  0x89   : > { %v501_v43 = vpop.permute.xlu1 %500 }
  0x8d   : > { %v506_v44 = vpop.permute.xlu1 %505 }
  0x91   : > { %v516_v45 = vpop.permute.xlu1 %515 }
  0x95   : > { %v521_v46 = vpop.permute.xlu1 %520 }
  0x99   : > { %v526_v48 = vpop.permute.xlu1 %525 }
  0x9d   : > { %v531_v55 = vpop.permute.xlu1 %530 }
  0xa1   : > { %v536_v5 = vpop.permute.xlu1 %535 }
  0xed   : > { %v444_v9 = vpop.f32.mrb[0].mxu0 }
  0xee   : > { %v445_v10 = vadd.f32 %v1032_v8, %v444_v9  ;;  %v1100_v11 = vpop.f32.mrb[1].mxu0 }
  0xef   : > { %v447_v12 = vpop.f32.mrb[2].mxu0 }
  0xf0   : > { %v1101_v13 = vpop.f32.mrb[3].mxu0  ;;  %v453_v14 = vsel %vm452_vm3, %v445_v10, 0.0 }
  0xf1   : > { %454 = vadd.xlane.f32.xlu0 %v453_v14 }
 0x17e   : > { %v455_v15 = vpop.xlane.xlu0 %454 }
 0x17f   : > { %v457_v16 = vmul.f32 0.0078125, %v455_v15 }
 0x181   : > { %v458_v17 = vsub.f32 %v445_v10, %v457_v16 }
 0x183   : > { %v459_v18 = vmul.f32 %v458_v17, %v458_v17 }
 0x185   : > { %v460_v19 = vsel %vm452_vm3, %v459_v18, 0.0 }
 0x186   : > { %461 = vadd.xlane.f32.xlu0 %v460_v19 }
 0x19c   : > { %510 = vperm.xlu0 %1160, %v492_v23  }
 0x213   : > { %v462_v30 = vpop.xlane.xlu0 %461 }
 0x214   : > { %v463_v31 = vmul.f32 0.0078125, %v462_v30 }
 0x216   : > { %v464_v32 = vadd.f32 1e-05, %v463_v31 }
 0x218   : > { %1170 = vrsqrt.f32 %v464_v32 }
 0x21b   : > { %v511_v51 = vpop.permute.xlu0 %510 }
 0x222   : > { %v1171_v33 = vpop.eup %1170 }
 0x223   : > { %v466_v35 = vmul.f32 %v1171_v33, %v458_v17 }
 0x225   : > { %v473_v37 = vmul.f32 %v1039_v34, %v466_v35 }
 0x227   : > { %v480_v38 = vadd.f32 %v1040_v36, %v473_v37 }
 0x229   : > { %v489_v39 = vpack.c.bf16 %v480_v38, %v480_v38 }
 0x22b   : > { %1102 = vmatprep.subr.bf16.mxu0 %v489_v39 }
 0x22c   : > { %1103 = vmatpush3.bf16.xpose.msra.mxu0 %v489_v39 }
 0x233   : > { %1105 = vmatmul.mubr.bf16.vlgmr.msra.gmra.mrb[4].mxu0 %v1167_v40  ;;  %v1051_v40 = vld [vmem:[%s1414_s9 + $0x2] sm:$0x3] }
 0x234   : > { %1108 = vmatprep.mubr.bf16.mxu0 %v1168_v41  ;;  %v728_v41 = vsel %vm726_vm5, %v1051_v40, 0 }
 0x235   : > { %1113 = vmatpush3.bf16.msra.mxu1 %v728_v41 }
 0x236   : > { %1118 = vmatprep.subr.bf16.mxu1 %v1184_v1 }
 0x23b   : > { %1109 = vmatmul.mubr.bf16.gmra.mrb[8].mxu0 %v1169_v42 }
 0x306   : > { %v1106_v47 = vpop.f32.mrb[4].mxu0 }
 0x307   : > { %v596_v49 = vpop.f32.mrb[5].mxu0  ;;  %v605_v53 = vadd.f32 %v1106_v47, %v511_v51 }
 0x308   : > { %v1107_v50 = vpop.f32.mrb[6].mxu0  ;;  %v597_v54 = vadd.f32 %v596_v49, %v501_v43 }
 0x309   : > { %v599_v52 = vpop.f32.mrb[7].mxu0  ;;  %v608_v56 = vadd.f32 %v1107_v50, %v516_v45  ;;  %v1048_v50 = vld [vmem:[%s1412_s7 + $0x1] ss:$0 sm:$0xff] }
 0x30a   : > { %v600_v57 = vadd.f32 %v599_v52, %v506_v44  ;;  %v627_v60 = vadd.f32 %v605_v53, %v597_v54 }
 0x30c   : > { %v628_v0 = vadd.f32 %v608_v56, %v600_v57 }
 0x30e   : > { %v1110_v58 = vpop.f32.mrb[8].mxu0 }
 0x30f   : > { %v612_v59 = vpop.f32.mrb[9].mxu0  ;;  %v621_v2 = vadd.f32 %v1110_v58, %v531_v55 }
 0x310   : > { %v613_v61 = vadd.f32 %v612_v59, %v521_v46  ;;  %v1111_v62 = vpop.f32.mrb[10].mxu0 }
 0x311   : > { %v615_v63 = vpop.f32.mrb[11].mxu0  ;;  %v624_v6 = vadd.f32 %v1111_v62, %v536_v5  ;;  %v1058_v5 = vld [vmem:[%s1414_s9 + $0x4] sm:$0x3] }
 0x312   : > { %v629_v3 = vadd.f32 %v627_v60, %v613_v61  ;;  %v616_v4 = vadd.f32 %v615_v63, %v526_v48  ;;  %v1045_v63 = vld [vmem:[%s1412_s7] ss:$0 sm:$0xff] }
 0x314   : > { %v630_v7 = vadd.f32 %v628_v0, %v616_v4  ;;  %v631_v8 = vadd.f32 %v629_v3, %v621_v2  ;;  %v1046_v3 = vld [vmem:[%s1413_s8] ss:$0 sm:$0xff] }
 0x316   : > { %v634_v9 = vsel %vm633_vm4, %v631_v8, 0.0  ;;  %v632_v10 = vadd.f32 %v630_v7, %v624_v6  ;;  %v847_v8 = vsel %vm726_vm5, %v1058_v5, 0 }
 0x317   : > { %635 = vadd.xlane.f32.xlu1 %v634_v9 }
 0x318   : > { %v637_v11 = vsel %vm633_vm4, %v632_v10, 0.0 }
 0x319   : > { %638 = vadd.xlane.f32.xlu0 %v637_v11  ;;  %v1055_v11 = vld [vmem:[%s1412_s7 + $0x2] ss:$0 sm:$0xff] }
 0x3a4   : > { %v636_v12 = vpop.xlane.xlu1 %635 }
 0x3a5   : > { %v640_v13 = vmul.f32 0.0625, %v636_v12 }
 0x3a6   : > { %v639_v14 = vpop.xlane.xlu0 %638 }
 0x3a7   : > { %v642_v15 = vsub.f32 %v597_v54, %v640_v13  ;;  %v644_v16 = vsub.f32 %v605_v53, %v640_v13  ;;  %v641_v17 = vmul.f32 0.0625, %v639_v14  ;;  %v1328_v18 = vsub.f32 %v613_v61, %v640_v13  ;;  %v1050_v54 = vld [vmem:[%s1413_s8 + $0x1] ss:$0 sm:$0xff]  ;;  %v1057_v14 = vld [vmem:[%s1413_s8 + $0x2] ss:$0 sm:$0xff] }
 0x3a8   : > { %v1330_v23 = vsub.f32 %v621_v2, %v640_v13 }
 0x3a9   : > { %v643_v19 = vsub.f32 %v600_v57, %v641_v17  ;;  %v645_v20 = vsub.f32 %v608_v56, %v641_v17  ;;  %v647_v21 = vsub.f32 %v616_v4, %v641_v17  ;;  %v650_v22 = vmul.f32 %v642_v15, %v642_v15  ;;  %v697_v56 = vld [vmem:[%s1414_s9] sm:$0x3] }
 0x3aa   : > { %v652_v24 = vmul.f32 %v644_v16, %v644_v16  ;;  %v656_v28 = vmul.f32 %v1328_v18, %v1328_v18  ;;  %v1334_v29 = vsub.f32 %v624_v6, %v641_v17  ;;  %v660_v33 = vmul.f32 %v1330_v23, %v1330_v23 }
 0x3ab   : > { %v651_v25 = vmul.f32 %v643_v19, %v643_v19  ;;  %v653_v26 = vmul.f32 %v645_v20, %v645_v20  ;;  %v657_v31 = vmul.f32 %v647_v21, %v647_v21  ;;  %v775_v60 = vsel %vm726_vm5, %v697_v56, 0 }
 0x3ac   : > { %v654_v27 = vadd.f32 %v652_v24, %v650_v22  ;;  %v661_v36 = vmul.f32 %v1334_v29, %v1334_v29  ;;  %v1061_v22 = vld [vmem:[%s1412_s7 + $0x3] ss:$0 sm:$0xff] }
 0x3ad   : > { %v655_v30 = vadd.f32 %v653_v26, %v651_v25  ;;  %v1063_v26 = vld [vmem:[%s1413_s8 + $0x3] ss:$0 sm:$0xff] }
 0x3ae   : > { %v658_v32 = vadd.f32 %v656_v28, %v654_v27 }
 0x3af   : > { %v659_v34 = vadd.f32 %v657_v31, %v655_v30 }
 0x3b0   : > { %v662_v35 = vadd.f32 %v660_v33, %v658_v32 }
 0x3b1   : > { %v663_v38 = vadd.f32 %v661_v36, %v659_v34 }
 0x3b2   : > { %v664_v37 = vsel %vm633_vm4, %v662_v35, 0.0 }
 0x3b3   : > { %665 = vadd.xlane.f32.xlu1 %v664_v37  ;;  %v667_v39 = vsel %vm633_vm4, %v663_v38, 0.0 }
 0x3b7   : > { %668 = vadd.xlane.f32.xlu1 %v667_v39 }
 0x440   : > { %v666_v42 = vpop.xlane.xlu1 %665 }
 0x441   : > { %v670_v43 = vmul.f32 0.0625, %v666_v42 }
 0x443   : > { %v672_v44 = vadd.f32 1e-05, %v670_v43 }
 0x444   : > { %v669_v45 = vpop.xlane.xlu1 %668 }
 0x445   : > { %1172 = vrsqrt.f32 %v672_v44  ;;  %v671_v46 = vmul.f32 0.0625, %v669_v45 }
 0x447   : > { %v673_v47 = vadd.f32 1e-05, %v671_v46 }
 0x449   : > { %1174 = vrsqrt.f32 %v673_v47 }
 0x44f   : > { %v1173_v48 = vpop.eup %1172 }
 0x450   : > { %v698_v49 = vmul.f32 %v1173_v48, %v644_v16  ;;  %v676_v62 = vmul.f32 %v1173_v48, %v642_v15  ;;  %v818_v10 = vmul.f32 %v1173_v48, %v1328_v18  ;;  %v1064_v16 = vld [vmem:[%s1414_s9 + $0x6] sm:$0x3] }
 0x452   : > { %v708_v53 = vmul.f32 %v1048_v50, %v698_v49  ;;  %v685_v2 = vmul.f32 %v1045_v63, %v676_v62  ;;  %v828_v13 = vmul.f32 %v1055_v11, %v818_v10 }
 0x453   : > { %v1175_v51 = vpop.eup %1174 }
 0x454   : > { %v699_v52 = vmul.f32 %v1175_v51, %v645_v20  ;;  %v718_v57 = vadd.f32 %v1050_v54, %v708_v53  ;;  %v677_v61 = vmul.f32 %v1175_v51, %v643_v19  ;;  %v694_v6 = vadd.f32 %v1046_v3, %v685_v2 }
 0x455   : > { %v819_v9 = vmul.f32 %v1175_v51, %v647_v21  ;;  %v838_v17 = vadd.f32 %v1057_v14, %v828_v13  ;;  %v921_v19 = vsel %vm726_vm5, %v1064_v16, 0  ;;  %v893_v20 = vmul.f32 %v1175_v51, %v1334_v29 }
 0x456   : > { %v709_v55 = vmul.f32 %v1048_v50, %v699_v52  ;;  %v686_v0 = vmul.f32 %v1045_v63, %v677_v61  ;;  %v892_v21 = vmul.f32 %v1173_v48, %v1330_v23 }
 0x457   : > { %v829_v12 = vmul.f32 %v1055_v11, %v819_v9  ;;  %v903_v24 = vmul.f32 %v1061_v22, %v893_v20 }
 0x458   : > { %v719_v58 = vadd.f32 %v1050_v54, %v709_v55  ;;  %v695_v4 = vadd.f32 %v1046_v3, %v686_v0  ;;  %v902_v25 = vmul.f32 %v1061_v22, %v892_v21 }
 0x459   : > { %v839_v15 = vadd.f32 %v1057_v14, %v829_v12  ;;  %v913_v27 = vadd.f32 %v1063_v26, %v903_v24 }
 0x45a   : > { %v720_v59 = vpack.c.bf16 %v719_v58, %v718_v57  ;;  %v696_v7 = vpack.c.bf16 %v695_v4, %v694_v6  ;;  %v912_v28 = vadd.f32 %v1063_v26, %v902_v25 }
 0x45b   : > { %v840_v18 = vpack.c.bf16 %v839_v15, %v838_v17 }
 0x45c   : > { %1115 = vmatmul.mubr.msk.bf16.vlgmr.msra.gmra.mrb[0].mxu1 %vm633_vm4, %v720_v59  ;;  %v914_v29 = vpack.c.bf16 %v913_v27, %v912_v28 }
 0x45d   : > { %1119 = vmatpush3.bf16.msra.mxu1 %v775_v60  ;;  %1120 = vmatprep.mubr.msk.bf16.mxu1 %vm1185_vm0, %v1184_v1 }
 0x45e   : > { %1124 = vmatprep.subr.bf16.mxu1 %v1184_v1 }
 0x468   : > { %1121 = vmatmul.mubr.msk.bf16.vlgmr.msra.gmra.mrb[0].mxu1 %vm633_vm4, %v696_v7 }
 0x469   : > { %1125 = vmatpush3.bf16.msra.mxu1 %v847_v8  ;;  %1126 = vmatprep.mubr.msk.bf16.mxu1 %vm1185_vm0, %v1184_v1 }
 0x46a   : > { %1130 = vmatprep.subr.bf16.mxu1 %v1184_v1 }
 0x474   : > { %1127 = vmatmul.mubr.msk.bf16.vlgmr.msra.gmra.mrb[0].mxu1 %vm633_vm4, %v840_v18 }
 0x475   : > { %1131 = vmatpush3.bf16.msra.mxu1 %v921_v19  ;;  %1132 = vmatprep.mubr.msk.bf16.mxu1 %vm1185_vm0, %v1184_v1 }
 0x480   : > { %1133 = vmatmul.mubr.msk.bf16.vlgmr.msra.gmra.mrb[0].mxu1 %vm633_vm4, %v914_v29 }
 0x553   : > { %v957_v1 = vpop.f32.mrb[0].mxu1 }
 0x554   : > { %967 = vst.msk [vmem:[%s356_s12] sm:$0xff] %vm966_vm6, %v957_v1  ;;  %v1134_v23 = vpop.f32.mrb[1].mxu1 }
 0x555   : > { %v960_v30 = vpop.f32.mrb[2].mxu1 }
 0x556   : > { %968 = vst.msk [vmem:[%s356_s12 + $0x8] sm:$0xff] %vm966_vm6, %v960_v30  ;;  %v1135_v31 = vpop.f32.mrb[3].mxu1 }
 0x557 PF: > { %s20_s13 = sadd.s32 1, %s1182_s13  }
 0x558   : > { %p17_p4 = scmp.ge.s32.totalorder %s20_s13, 4  }
 0x55a   :  { %19 = sbr.rel (!%p17_p4) target bundleno = 1 (0x1), region = 99 }

</bundles_post_ra>
